<compile_context>
chip_gen: v7x
topology: tpu7x:2x2x1
jax: 0.10.0
libtpu: 0.0.40
codegen_flags: <defaults>
</compile_context>

<pallas_src>
import functools

import jax
import jax.numpy as jnp
from jax.experimental import pallas as pl
from jax.experimental.pallas import tpu as pltpu


def _conv_block_kernel(x_ref, halo_ref, w_ref, b_ref, o_ref, cols_ref, *,
                       kernel_size, dilation, negative_slope, d_model,
                       compute_dtype):
    # x_ref:    (Bt, TL, C_in)       current (unpadded) sequence tile, orig dtype
    # halo_ref: (Bt, 1, pad, C_in)   pad rows preceding the tile (row-0 replicas
    #                                for the first tile)
    # w_ref:    (k*C_in, Dp)         im2col weight (bf16), out-ch padded to 128
    # b_ref:    (1, Dp)              f32 bias (padded)
    # o_ref:    (Bt, TL, d_model)    d_model-wide output block (no lane padding)
    # cols_ref: (Bt, TL, k*C_in)     f32 VMEM im2col scratch
    bt, tl, c_in = x_ref.shape
    pad = (kernel_size - 1) * dilation
    dp = w_ref.shape[1]

    x = x_ref[...]                                           # (Bt, TL, C_in)
    halo = halo_ref[...].reshape(bt, pad, c_in)              # (Bt, pad, C_in)

    # im2col straight into the VMEM scratch with static ref stores (no
    # jnp.concatenate window/cols intermediates).  Tap j of output row t reads
    # window row t + j*dil, i.e. x row t - s (s = pad - j*dil) for t >= s and
    # a halo row otherwise.
    for j in range(kernel_size):
        s = pad - j * dilation
        lo = j * c_in
        if s > 0:
            cols_ref[:, 0:s, lo:lo + c_in] = halo[:, j * dilation:pad, :].astype(
                cols_ref.dtype)
        cols_ref[:, s:tl, lo:lo + c_in] = x[:, 0:tl - s, :].astype(cols_ref.dtype)

    # One wide MXU matmul: (Bt*TL, k*C_in) @ (k*C_in, Dp), f32 accumulation.
    cols = cols_ref[...].astype(compute_dtype).reshape(bt * tl,
                                                       kernel_size * c_in)
    acc = jnp.dot(cols, w_ref[...], preferred_element_type=jnp.float32)
    acc = acc + b_ref[...]                                   # f32 bias (1, Dp)
    acc = jnp.maximum(acc, negative_slope * acc)             # LeakyReLU
    if dp != d_model:
        acc = acc[:, :d_model]                               # in-vreg lane slice
    o_ref[...] = acc.reshape(bt, tl, d_model).astype(o_ref.dtype)


def conv_block_forward(x, weight, bias, *, dilation=1, negative_slope=0.01,
                       seq_tile=1024, batch_tile=8,
                       compute_dtype=jnp.bfloat16, out_dtype=None):
    """x: (B, L, C_in); weight: (d_model, C_in, k); bias: (d_model,).

    Returns (B, L, d_model), matching ConvBlock.forward in eval mode.
    `out_dtype` defaults to x.dtype; pass jnp.bfloat16 to halve output HBM
    bytes when the consumer tolerates it.
    """
    B, L, C_in = x.shape
    d_model, c_in_w, k = weight.shape
    if c_in_w != C_in:
        raise ValueError(f"weight C_in {c_in_w} != input C_in {C_in}")
    pad = (k - 1) * dilation
    if pad < 1:
        # k == 1 => the PyTorch module slices to an empty tensor; not supported.
        raise ValueError("kernel_size must be >= 2 (pad >= 1)")
    if L < pad:
        raise ValueError("sequence length must be >= (kernel_size-1)*dilation")

    out_dtype = jnp.dtype(x.dtype if out_dtype is None else out_dtype)

    # Lane-dense matmul N dimension (multiple of 128) — lives only in VMEM.
    dp = ((d_model + 127) // 128) * 128

    # ---- per-generation tile sizing ---------------------------------------
    try:
        vmem_cap = int(pltpu.get_tpu_info().vmem_capacity_bytes)
    except Exception:
        vmem_cap = 64 * 1024 * 1024          # conservative (v7x per-TC size)
    vmem_cap = max(vmem_cap, 32 * 1024 * 1024)
    budget = int(vmem_cap * 0.45)            # double-buffered working-set target

    x_b = jnp.dtype(x.dtype).itemsize
    o_b = out_dtype.itemsize
    c_b = jnp.dtype(compute_dtype).itemsize

    def step_bytes(bt_, tl_):
        xin = bt_ * tl_ * C_in * x_b                    # input block
        outb = bt_ * tl_ * d_model * o_b                # output block
        halo_b = bt_ * pad * C_in * x_b
        wts = k * C_in * dp * c_b + dp * 4
        cols = bt_ * tl_ * k * C_in * (4 + c_b)         # f32 scratch + bf16 copy
        accb = bt_ * tl_ * dp * 4                       # f32 accumulator
        return 2 * (xin + outb + halo_b + wts) + cols + accb

    min_tl = min(L, ((pad + 7) // 8) * 8)               # smallest legal seq tile
    seq_tile = max(8, (int(seq_tile) // 8) * 8)
    tl = L if L <= seq_tile else seq_tile
    tl = max(tl, min_tl)
    bt = max(1, min(int(batch_tile), B))
    if tl == L and L % 8 != 0:
        bt = 1                                           # keep (bt*tl) merge layout-free

    while step_bytes(bt, tl) > budget:
        if bt > 1:
            bt = (bt + 1) // 2
        elif tl > min_tl:
            tl = max(min_tl, ((tl // 2) // 8) * 8)
        else:
            break

    n_bat = -(-B // bt)
    n_seq = -(-L // tl)
    # Keep >= 2 grid steps so a 2-TC chip (v7x) can shard the parallel axes.
    if n_bat * n_seq < 2:
        if bt > 1:
            bt = (bt + 1) // 2
        elif tl > min_tl:
            tl = max(min_tl, ((tl // 2) // 8) * 8)
        n_bat = -(-B // bt)
        n_seq = -(-L // tl)

    ws = step_bytes(bt, tl)
    vmem_limit = min(2 * ws + (8 << 20), vmem_cap - (16 << 20))
    vmem_limit = max(vmem_limit, ws + (8 << 20), 32 << 20)
    vmem_limit = int(min(vmem_limit, vmem_cap))

    # ---- side inputs -------------------------------------------------------
    # Per-tile left halo: rows [li*tl - pad, li*tl) of x, clamped to row 0
    # (replicate padding).  Tiny gather; the full input is never re-written to
    # HBM as a padded copy and never cast outside the kernel.
    tile_starts = jnp.arange(n_seq, dtype=jnp.int32) * tl
    halo_rows = tile_starts[:, None] - pad + jnp.arange(pad, dtype=jnp.int32)[None, :]
    halo_rows = jnp.maximum(halo_rows, 0)                         # (n_seq, pad)
    halo = jnp.take(x, halo_rows.reshape(-1), axis=1).reshape(B, n_seq, pad, C_in)

    # im2col weight: W[o, c, j] -> w_flat[j*C_in + c, o], padded to Dp lanes.
    w_flat = jnp.transpose(weight, (2, 1, 0)).reshape(k * C_in, d_model)
    if dp != d_model:
        w_flat = jnp.pad(w_flat, ((0, 0), (0, dp - d_model)))
    w_flat = w_flat.astype(compute_dtype)
    b_pad = bias.astype(jnp.float32)
    if dp != d_model:
        b_pad = jnp.pad(b_pad, (0, dp - d_model))
    b_pad = b_pad.reshape(1, dp)

    kernel = functools.partial(
        _conv_block_kernel,
        kernel_size=k,
        dilation=dilation,
        negative_slope=negative_slope,
        d_model=d_model,
        compute_dtype=compute_dtype,
    )

    return pl.pallas_call(
        kernel,
        out_shape=jax.ShapeDtypeStruct((B, L, d_model), out_dtype),
        grid_spec=pltpu.PrefetchScalarGridSpec(
            num_scalar_prefetch=0,
            grid=(n_bat, n_seq),
            in_specs=[
                pl.BlockSpec((bt, tl, C_in), lambda bi, li: (bi, li, 0)),
                pl.BlockSpec((bt, 1, pad, C_in), lambda bi, li: (bi, li, 0, 0)),
                pl.BlockSpec((k * C_in, dp), lambda bi, li: (0, 0)),
                pl.BlockSpec((1, dp), lambda bi, li: (0, 0)),
            ],
            out_specs=pl.BlockSpec((bt, tl, d_model), lambda bi, li: (bi, li, 0)),
            scratch_shapes=[pltpu.VMEM((bt, tl, k * C_in), jnp.float32)],
        ),
        compiler_params=pltpu.CompilerParams(
            dimension_semantics=("parallel", "parallel"),
            vmem_limit_bytes=vmem_limit),
    )(x, halo, w_flat, b_pad)


def _reference(x, weight, bias, *, dilation=1, negative_slope=0.01,
               compute_dtype=jnp.float32):
    """Pure-JAX reference mirroring the PyTorch module (eval mode)."""
    B, L, _ = x.shape
    d_model, _, k = weight.shape
    pad = (k - 1) * dilation
    left = jnp.repeat(x[:, :1, :], pad, axis=1)
    x_pad = jnp.concatenate([left, x], axis=1).astype(compute_dtype)
    w = weight.astype(compute_dtype)
    out = jnp.zeros((B, L, d_model), jnp.float32)
    for j in range(k):
        out = out + jnp.einsum(
            'blc,oc->blo', x_pad[:, j * dilation:j * dilation + L, :],
            w[:, :, j], preferred_element_type=jnp.float32)
    out = out + bias[None, None, :].astype(jnp.float32)
    out = jnp.where(out > 0, out, negative_slope * out)
    return out.astype(x.dtype)


if __name__ == "__main__":
    key = jax.random.PRNGKey(0)
    k1, k2, k3, k4, k5, k6 = jax.random.split(key, 6)

    def run_case(kx, kw, kb, *, B, L, C_in, d_model, K, dilation):
        x = jax.random.normal(kx, (B, L, C_in), dtype=jnp.float32)
        fan_in = C_in * K
        bound = 1.0 / (fan_in ** 0.5)
        weight = jax.random.uniform(kw, (d_model, C_in, K), jnp.float32,
                                    minval=-bound, maxval=bound)
        bias = jax.random.uniform(kb, (d_model,), jnp.float32,
                                  minval=-bound, maxval=bound)

        out = conv_block_forward(x, weight, bias, dilation=dilation)
        out = jax.block_until_ready(out)
        assert out.shape == (B, L, d_model), out.shape

        # bf16-matched reference (same MXU numerics as the kernel) -> tight tol.
        ref_bf16 = _reference(x, weight, bias, dilation=dilation,
                              compute_dtype=jnp.bfloat16)
        assert jnp.allclose(out, ref_bf16, atol=2e-3, rtol=2e-3), \
            "mismatch vs bf16-matched reference"

        # Full-f32 module reference -> loose tol (bf16 cast is the only delta).
        ref_f32 = _reference(x, weight, bias, dilation=dilation,
                             compute_dtype=jnp.float32)
        assert jnp.allclose(out, ref_f32, atol=5e-2, rtol=5e-2), \
            "mismatch vs f32 reference"

    # Small shapes consistent with the module: emb_len=32, d_model=64, k=3.
    run_case(k1, k2, k3, B=2, L=16, C_in=32, d_model=64, K=3, dilation=1)
    # Exercises dilation, multiple seq tiles with a partial last tile, and the
    # dp == d_model (no lane-pad / no slice) path.
    run_case(k4, k5, k6, B=1, L=20, C_in=32, d_model=128, K=3, dilation=2)

    print("KERNEL_OK")
</pallas_src>

<mosaic_0001>
module attributes {stable_mosaic.version = 11 : i64} {
  func.func @_conv_block_kernel(%arg0: i32, %arg1: i32, %arg2: memref<1x16x32xf32, #tpu.memory_space<vmem>>, %arg3: memref<1x1x2x32xf32, #tpu.memory_space<vmem>>, %arg4: memref<96x128xbf16, #tpu.memory_space<vmem>>, %arg5: memref<1x128xf32, #tpu.memory_space<vmem>>, %arg6: memref<1x16x64xf32, #tpu.memory_space<vmem>>, %arg7: memref<1x16x96xf32, #tpu.memory_space<vmem>>) attributes {dimension_semantics = [#tpu.dimension_semantics<parallel>, #tpu.dimension_semantics<parallel>], iteration_bounds = array<i64: 2, 1>, scalar_prefetch = 0 : i64, scratch_operands = 1 : i64, tpu.core_type = #tpu.core_type<tc>, window_params = [{transform_indices = @transform_0, window_bounds = array<i64: 1, 16, 32>}, {transform_indices = @transform_1, window_bounds = array<i64: 1, 1, 2, 32>}, {pipeline_mode = #tpu.pipeline_mode<synchronous>, transform_indices = @transform_2, window_bounds = array<i64: 96, 128>}, {pipeline_mode = #tpu.pipeline_mode<synchronous>, transform_indices = @transform_3, window_bounds = array<i64: 1, 128>}, {transform_indices = @transform_4, window_bounds = array<i64: 1, 16, 64>}]} {
    %c0 = arith.constant 0 : index
    %c0_0 = arith.constant 0 : index
    %c0_1 = arith.constant 0 : index
    %0 = vector.load %arg2[%c0, %c0_0, %c0_1] : memref<1x16x32xf32, #tpu.memory_space<vmem>>, vector<1x16x32xf32>
    %c0_2 = arith.constant 0 : index
    %c0_3 = arith.constant 0 : index
    %c0_4 = arith.constant 0 : index
    %c0_5 = arith.constant 0 : index
    %1 = vector.load %arg3[%c0_2, %c0_3, %c0_4, %c0_5] : memref<1x1x2x32xf32, #tpu.memory_space<vmem>>, vector<1x1x2x32xf32>
    %2 = vector.shape_cast %1 : vector<1x1x2x32xf32> to vector<1x2x32xf32>
    %c0_6 = arith.constant 0 : index
    %c0_7 = arith.constant 0 : index
    %c0_8 = arith.constant 0 : index
    %3 = vector.load %arg7[%c0_6, %c0_7, %c0_8] : memref<1x16x96xf32, #tpu.memory_space<vmem>>, vector<1x2x32xf32>
    tpu.vector_store %arg7[%c0_6, %c0_7, %c0_8], %2 {strides = array<i32>} : memref<1x16x96xf32, #tpu.memory_space<vmem>>, vector<1x2x32xf32>,
    %4 = vector.extract_strided_slice %0 {offsets = [0, 0, 0], sizes = [1, 14, 32], strides = [1, 1, 1]} : vector<1x16x32xf32> to vector<1x14x32xf32>
    %c0_9 = arith.constant 0 : index
    %c2 = arith.constant 2 : index
    %c0_10 = arith.constant 0 : index
    %5 = vector.load %arg7[%c0_9, %c2, %c0_10] : memref<1x16x96xf32, #tpu.memory_space<vmem>>, vector<1x14x32xf32>
    tpu.vector_store %arg7[%c0_9, %c2, %c0_10], %4 {strides = array<i32>} : memref<1x16x96xf32, #tpu.memory_space<vmem>>, vector<1x14x32xf32>,
    %6 = vector.extract_strided_slice %2 {offsets = [0, 1, 0], sizes = [1, 1, 32], strides = [1, 1, 1]} : vector<1x2x32xf32> to vector<1x1x32xf32>
    %c0_11 = arith.constant 0 : index
    %c0_12 = arith.constant 0 : index
    %c32 = arith.constant 32 : index
    %7 = vector.load %arg7[%c0_11, %c0_12, %c32] : memref<1x16x96xf32, #tpu.memory_space<vmem>>, vector<1x1x32xf32>
    tpu.vector_store %arg7[%c0_11, %c0_12, %c32], %6 {strides = array<i32>} : memref<1x16x96xf32, #tpu.memory_space<vmem>>, vector<1x1x32xf32>,
    %8 = vector.extract_strided_slice %0 {offsets = [0, 0, 0], sizes = [1, 15, 32], strides = [1, 1, 1]} : vector<1x16x32xf32> to vector<1x15x32xf32>
    %c0_13 = arith.constant 0 : index
    %c1 = arith.constant 1 : index
    %c32_14 = arith.constant 32 : index
    %9 = vector.load %arg7[%c0_13, %c1, %c32_14] : memref<1x16x96xf32, #tpu.memory_space<vmem>>, vector<1x15x32xf32>
    tpu.vector_store %arg7[%c0_13, %c1, %c32_14], %8 {strides = array<i32>} : memref<1x16x96xf32, #tpu.memory_space<vmem>>, vector<1x15x32xf32>,
    %c0_15 = arith.constant 0 : index
    %c0_16 = arith.constant 0 : index
    %c64 = arith.constant 64 : index
    %10 = vector.load %arg7[%c0_15, %c0_16, %c64] : memref<1x16x96xf32, #tpu.memory_space<vmem>>, vector<1x16x32xf32>
    tpu.vector_store %arg7[%c0_15, %c0_16, %c64], %0 {strides = array<i32>} : memref<1x16x96xf32, #tpu.memory_space<vmem>>, vector<1x16x32xf32>,
    %c0_17 = arith.constant 0 : index
    %c0_18 = arith.constant 0 : index
    %c0_19 = arith.constant 0 : index
    %11 = vector.load %arg7[%c0_17, %c0_18, %c0_19] : memref<1x16x96xf32, #tpu.memory_space<vmem>>, vector<1x16x96xf32>
    %12 = arith.truncf %11 : vector<1x16x96xf32> to vector<1x16x96xbf16>
    %13 = vector.shape_cast %12 : vector<1x16x96xbf16> to vector<16x96xbf16>
    %c0_20 = arith.constant 0 : index
    %c0_21 = arith.constant 0 : index
    %14 = vector.load %arg4[%c0_20, %c0_21] : memref<96x128xbf16, #tpu.memory_space<vmem>>, vector<96x128xbf16>
    %cst = arith.constant dense<0.000000e+00> : vector<16x128xf32>
    %15 = tpu.matmul %13, %14, %cst {dimension_numbers = #tpu.dot_dimension_numbers<[1], [0], [0], [1], [0, 0, 1, 1], [], []>} : vector<16x96xbf16>, vector<96x128xbf16>, vector<16x128xf32> -> vector<16x128xf32>
    %c0_22 = arith.constant 0 : index
    %c0_23 = arith.constant 0 : index
    %16 = vector.load %arg5[%c0_22, %c0_23] : memref<1x128xf32, #tpu.memory_space<vmem>>, vector<1x128xf32>
    %17 = vector.broadcast %16 : vector<1x128xf32> to vector<16x128xf32>
    %18 = arith.addf %15, %17 : vector<16x128xf32>
    %cst_24 = arith.constant 0.00999999977 : f32
    %19 = vector.broadcast %cst_24 : f32 to vector<16x128xf32>
    %20 = arith.mulf %19, %18 : vector<16x128xf32>
    %21 = arith.maximumf %18, %20 : vector<16x128xf32>
    %22 = vector.extract_strided_slice %21 {offsets = [0, 0], sizes = [16, 64], strides = [1, 1]} : vector<16x128xf32> to vector<16x64xf32>
    %23 = vector.shape_cast %22 : vector<16x64xf32> to vector<1x16x64xf32>
    %c0_25 = arith.constant 0 : index
    %c0_26 = arith.constant 0 : index
    %c0_27 = arith.constant 0 : index
    %24 = vector.load %arg6[%c0_25, %c0_26, %c0_27] : memref<1x16x64xf32, #tpu.memory_space<vmem>>, vector<1x16x64xf32>
    tpu.vector_store %arg6[%c0_25, %c0_26, %c0_27], %23 {strides = array<i32>} : memref<1x16x64xf32, #tpu.memory_space<vmem>>, vector<1x16x64xf32>,
    return
  }
  func.func @transform_0(%arg0: i32, %arg1: i32) -> (i32, i32, i32) {
    %c0_i32 = arith.constant 0 : i32
    %c0_i32_0 = arith.constant 0 : i32
    return %arg0, %arg1, %c0_i32 : i32, i32, i32
  }
  func.func @transform_1(%arg0: i32, %arg1: i32) -> (i32, i32, i32, i32) {
    %c0_i32 = arith.constant 0 : i32
    %c0_i32_0 = arith.constant 0 : i32
    %c0_i32_1 = arith.constant 0 : i32
    return %arg0, %arg1, %c0_i32, %c0_i32_0 : i32, i32, i32, i32
  }
  func.func @transform_2(%arg0: i32, %arg1: i32) -> (i32, i32) {
    %c0_i32 = arith.constant 0 : i32
    %c0_i32_0 = arith.constant 0 : i32
    %c0_i32_1 = arith.constant 0 : i32
    return %c0_i32, %c0_i32_0 : i32, i32
  }
  func.func @transform_3(%arg0: i32, %arg1: i32) -> (i32, i32) {
    %c0_i32 = arith.constant 0 : i32
    %c0_i32_0 = arith.constant 0 : i32
    %c0_i32_1 = arith.constant 0 : i32
    return %c0_i32, %c0_i32_0 : i32, i32
  }
  func.func @transform_4(%arg0: i32, %arg1: i32) -> (i32, i32, i32) {
    %c0_i32 = arith.constant 0 : i32
    %c0_i32_0 = arith.constant 0 : i32
    return %arg0, %arg1, %c0_i32 : i32, i32, i32
  }
}

</mosaic_0001>

<bundles_post_ra>
// kernel: tpu_custom_call.1
= control target key start
LH: loop header
LB: loop body
LE: loop exit
PB: predicated region body
PF: predicated region fallthrough
CT: control target
= control target key end

     0   :  { %s1199_s0 = inlined_call_operand.hbm [shape: f32[2,16,32], index: 0, kind: input, shape index: {}]   ;;  %s1200_s1 = inlined_call_operand.hbm [shape: f32[2,1,2,32], index: 1, kind: input, shape index: {}]   ;;  %s1201_s2 = inlined_call_operand.hbm [shape: bf16[96,128], index: 2, kind: input, shape index: {}]   ;;  %s1202_s3 = inlined_call_operand.vmem [shape: f32[1,128], index: 3, kind: input, shape index: {}]   ;;  %s1203_s4 = inlined_call_operand.hbm [shape: f32[2,16,64], index: 4, kind: output, shape index: {}]  }
   0x1   :  { %1209 = sst [smem:[#allocation16_spill]] %s1199_s0 }
   0x2   :  { %1210 = sst [smem:[#allocation17_spill]] %s1201_s2 }
   0x3   :  { %9 = vsyncpa [#allocation4], 0 }
   0x4   :  { %11 = vsyncpa [#allocation4 + $0x1], 0 }
   0x5   :  { %12 = vsyncpa [#allocation7], 0 }
   0x6   :  { %14 = vsyncpa [#allocation7 + $0x1], 0 }
   0x7   :  { %15 = vsyncpa [#allocation5], 0 }
   0x8   :  { %17 = vsyncpa [#allocation5 + $0x1], 0  ;;  %s939_s15 = smov 0   ;;  %s941_s16 = smov 0  }
   0x9   :  { %s943_s17 = smov 0   ;;  %s945_s18 = smov 0  }
   0xa   :  { %s947_s19 = smov 0   ;;  %s949_s20 = smov 0  }
   0xb LB: > { %s970_s21 = sadd.s32 4294967295, %s898_s20   ;;  %s574_s22 = sadd.s32 4294967294, %s898_s20   ;;  %s898_s20 = sphi %s949_s20, %s23_s20   ;;  %s894_s19 = sphi %s947_s19, %s1237_s19   ;;  %s890_s18 = sphi %s945_s18, %s1236_s18   ;;  %s886_s17 = sphi %s943_s17, %s1235_s17   ;;  %s882_s16 = sphi %s941_s16, %s1234_s16   ;;  %s878_s15 = sphi %s939_s15, %s1233_s15  }
   0xc   : > { %p57_p0 = scmp.ne.s32.totalorder %s882_s16, %s878_s15  ;;  %p1204_p1 = scmp.eq.s32.totalorder %s970_s21, 0 }
   0xd   : > { %p159_p3 = scmp.eq.s32.totalorder %s574_s22, 1  ;;  %p575_p5 = scmp.ge.s32.totalorder %s898_s20, 1 }
   0xe   : > { %p979_p4 = por %p1204_p1, %p57_p0  ;;  %p166_p7 = scmp.lt.s32.totalorder %s898_s20, 3 }
   0xf   : > { %p984_p6 = por %p159_p3, %p57_p0  ;;  %s900_s26 = smov [#allocation8]  }
  0x10   : > { %s1211_s23 = scalar_select %p979_p4, 1, 0 }
  0x11   : > { %s1212_s24 = scalar_select %p984_p6, 1, 0 }
  0x12   : > { %p989_p8 = pnand %p575_p5, %p166_p7  ;;  %s178_s27 = sshll.u32 %s900_s26, 4  ;;  %s179_s27 = int_to_ptr.vmem [resolvable:$true] %s178_s27 }
  0x13   : > { %s35_s29 = sadd.s32 1, %s894_s19  ;;  %s1215_s2 = sld [smem:[#allocation17_spill]] }
  0x14   : > { %s1213_s25 = scalar_select %p989_p8, 1, 0 }
  0x15   : > { %p636_p9 = pneg %p989_p8 }
  0x17   : > { %p998_p11 = pnand %p636_p9, %p1204_p1 }
  0x19   : > { %s720_s6 = scalar_lea.hbm %s1215_s2, 768  ;;  %p722_p13 = pneg %p998_p11 }
  0x1a   : > { %p721_p12 = scmp.ne.s32.totalorder %s1215_s2, %s720_s6  ;;  %p727_p5 = scmp.lt.u32.totalorder %s720_s6, %s1215_s2 }
  0x1c   : > { %p723_p0 = pnand %p722_p13, %p721_p12 }
  0x1e   : > { %p724_p3 = pneg %p723_p0 }
  0x20   : > { %p729_p7 = pnand %p727_p5, %p724_p3 }
  0x22   : > { %732 = shalt.err (!%p729_p7)
}
  0x23   : > { %s733_s11 = scalar_lea.vmem %s179_s27, 768  ;;  %p741_p2 = scmp.lt.s32.totalorder %s179_s27, %s179_s27 }
  0x24   : > { %p734_p9 = scmp.ne.s32.totalorder %s179_s27, %s733_s11  ;;  %p742_p6 = scmp.lt.s32.totalorder %s733_s11, %s733_s11 }
  0x26   : > { %p736_p10 = pnand %p734_p9, %p722_p13  ;;  %p743_p4 = por %p742_p6, %p741_p2 }
  0x28   : > { %p737_p1 = pneg %p736_p10 }
  0x2a   : > { %p744_p8 = pnand %p743_p4, %p737_p1 }
  0x2c   : > { %747 = shalt.err (!%p744_p8)
}
  0x2d   : > { %s901_s12 = smov 64   ;;  %s902_s13 = smov 4  }
  0x2e   : > { %639 = dma.hbm_to_vmem [thread:$0]  (!%p998_p11), %s1215_s2, 768, %s179_s27, [#allocation7], %s901_s12, %s901_s12, %s902_s13  }
  0x2f   : > { %p37_p1 = scmp.ge.s32.totalorder %s35_s29, 2  ;;  %s44_s26 = sadd.s32 1, %s886_s17 }
  0x30   : > { %p51_p2 = scmp.ne.s32.totalorder %s886_s17, %s882_s16  ;;  %p52_p4 = scmp.eq.s32.totalorder %s898_s20, 0 }
  0x31   : > { %s1239_s29 = smov (%p37_p1, %s35_s29), 0  ;;  %p1218_p8 = scmp.eq.s32.totalorder %s970_s21, 1 }
  0x32   : > { %1216 = sst [smem:[#allocation14_spill]] %s1239_s29  ;;  %p1025_p6 = por %p52_p4, %p51_p2 }
  0x33   : > { %p1031_p10 = por %p1218_p8, %p51_p2  ;;  %s39_s5 = ssub.s32 %s894_s19, %s1239_s29 }
  0x34   : > { %p652_p11 = scmp.lt.s32.totalorder %s898_s20, 2  ;;  %p42_p12 = scmp.eq.s32.totalorder %s39_s5, 0 }
  0x35   : > { %s1219_s28 = scalar_select %p1031_p10, 1, 0 }
  0x36   : > { %s1039_s27 = sand.u32 1, %s886_s17   ;;  %s601_s8 = sshll.u32 %s894_s19, 8 }
  0x37   : > { %s578_s6 = sshll.u32 %s1039_s27, 4  ;;  %s1221_s0 = sld [smem:[#allocation16_spill]] }
  0x38   : > { %s1043_s7 = scalar_select %p42_p12, %s886_s17, %s44_s26  }
  0x39   : > { %s199_s12 = scalar_lea.vmem [#allocation3], %s578_s6  ;;  %p1055_p13 = pnand %p652_p11, %p1025_p6 }
  0x3a   : > { %1220 = sst [smem:[#allocation15_spill]] %s1043_s7  ;;  %s208_s13 = sshll.u32 %s199_s12, 4  ;;  %s1051_s13 = int_to_ptr.vmem [resolvable:$true] %s208_s13 }
  0x3b   : > { %s196_s26 = scalar_lea.sflag [#allocation4], %s1039_s27  ;;  %p750_p3 = pneg %p1055_p13 }
  0x3d   : > { %s1049_s11 = scalar_lea.hbm %s1221_s0, %s601_s8  ;;  %s753_s30 = scalar_lea.hbm %s1221_s0, 512 }
  0x3e   : > { %s748_s5 = scalar_lea.hbm %s1049_s11, 256  ;;  %p754_p9 = scmp.lt.u32.totalorder %s1049_s11, %s1221_s0 }
  0x3f   : > { %p749_p0 = scmp.ne.s32.totalorder %s1049_s11, %s748_s5  ;;  %p755_p1 = scmp.lt.u32.totalorder %s753_s30, %s748_s5 }
  0x40   : > { %p757_p4 = scmp.lt.u32.totalorder %s748_s5, %s1049_s11 }
  0x41   : > { %p751_p5 = pnand %p750_p3, %p749_p0  ;;  %p756_p2 = por %p755_p1, %p754_p9 }
  0x43   : > { %p752_p7 = pneg %p751_p5  ;;  %p758_p6 = por %p757_p4, %p756_p2 }
  0x45   : > { %p759_p8 = pnand %p758_p6, %p752_p7 }
  0x47   : > { %762 = shalt.err (!%p759_p8)
}
  0x48   : > { %s763_s12 = scalar_lea.vmem %s1051_s13, 256  ;;  %s903_s6 = smov [#allocation3]  }
  0x49   : > { %p764_p11 = scmp.ne.s32.totalorder %s1051_s13, %s763_s12  ;;  %s768_s8 = sshll.u32 %s903_s6, 4  ;;  %s769_s8 = int_to_ptr.vmem [resolvable:$false] %s768_s8 }
  0x4a   : > { %s770_s9 = scalar_lea.vmem %s769_s8, 512  ;;  %p771_p5 = scmp.lt.s32.totalorder %s1051_s13, %s769_s8 }
  0x4b   : > { %p766_p12 = pnand %p764_p11, %p750_p3  ;;  %p772_p9 = scmp.lt.s32.totalorder %s770_s9, %s763_s12 }
  0x4d   : > { %p767_p0 = pneg %p766_p12  ;;  %p773_p1 = por %p772_p9, %p771_p5 }
  0x4f   : > { %p774_p2 = pnand %p773_p1, %p767_p0 }
  0x51   : > { %777 = shalt.err (!%p774_p2)
}
  0x52   : > { %s904_s5 = smov 128   ;;  %s905_s30 = smov 8  }
  0x53   : > { %643 = dma.hbm_to_vmem [thread:$0]  (!%p1055_p13), %s1049_s11, 256, %s1051_s13, %s196_s26, %s904_s5, %s904_s5, %s905_s30  }
  0x54   : > { %s581_s10 = sshll.u32 %s1039_s27, 1  ;;  %s582_s6 = sshll.u32 %s894_s19, 5 }
  0x55   : > { %s1093_s9 = scalar_lea.hbm %s1200_s1, %s582_s6  ;;  %s222_s22 = scalar_lea.vmem [#allocation6], %s581_s10 }
  0x56   : > { %s230_s0 = sshll.u32 %s222_s22, 4  ;;  %s1223_s2 = sand.u32 1, %s898_s20   ;;  %s231_s0 = int_to_ptr.vmem [resolvable:$true] %s230_s0 }
  0x57   : > { %s219_s29 = scalar_lea.sflag [#allocation7], %s1223_s2  ;;  %s778_s7 = scalar_lea.hbm %s1093_s9, 32 }
  0x58   : > { %p779_p7 = scmp.ne.s32.totalorder %s1093_s9, %s778_s7  ;;  %s783_s13 = scalar_lea.hbm %s1200_s1, 64 }
  0x59   : > { %p784_p8 = scmp.lt.u32.totalorder %s1093_s9, %s1200_s1  ;;  %p785_p11 = scmp.lt.u32.totalorder %s783_s13, %s778_s7 }
  0x5a   : > { %p781_p4 = pnand %p779_p7, %p750_p3  ;;  %p787_p0 = scmp.lt.u32.totalorder %s778_s7, %s1093_s9 }
  0x5b   : > { %p786_p12 = por %p785_p11, %p784_p8 }
  0x5c   : > { %p782_p6 = pneg %p781_p4 }
  0x5d   : > { %p788_p5 = por %p787_p0, %p786_p12 }
  0x5f   : > { %p789_p9 = pnand %p788_p5, %p782_p6 }
  0x61   : > { %792 = shalt.err (!%p789_p9)
}
  0x62   : > { %s793_s2 = scalar_lea.vmem %s231_s0, 32  ;;  %s906_s22 = smov [#allocation6]  }
  0x63   : > { %p794_p1 = scmp.ne.s32.totalorder %s231_s0, %s793_s2  ;;  %s798_s30 = sshll.u32 %s906_s22, 4  ;;  %s799_s30 = int_to_ptr.vmem [resolvable:$false] %s798_s30 }
  0x64   : > { %s800_s10 = scalar_lea.vmem %s799_s30, 64  ;;  %p801_p4 = scmp.lt.s32.totalorder %s231_s0, %s799_s30 }
  0x65   : > { %p796_p2 = pnand %p794_p1, %p750_p3  ;;  %p802_p10 = scmp.lt.s32.totalorder %s800_s10, %s793_s2 }
  0x67   : > { %p797_p7 = pneg %p796_p2  ;;  %p803_p8 = por %p802_p10, %p801_p4 }
  0x69   : > { %p804_p11 = pnand %p803_p8, %p797_p7 }
  0x6b   : > { %807 = shalt.err (!%p804_p11)
}
  0x6c   : > { %646 = dma.hbm_to_vmem [thread:$0]  (!%p1055_p13), %s1093_s9, 32, %s231_s0, %s219_s29  }
  0x6d   : > { %p1224_p6 = scmp.ne.s32.totalorder %s1213_s25, 0 }
  0x6e   : > { %s1119_s7 = sand.u32 (!%p1224_p6), 1, %s882_s16   ;;  %p1225_p10 = scmp.ne.s32.totalorder (!%p1224_p6), %s1211_s23, 0 }
  0x6f   : > { %239 = sbr.rel (%p1224_p6) target bundleno = 495 (0x1ef), region = 36  ;;  %s584_s6 = sshll.u32 (!%p1224_p6), %s1119_s7, 4 }
  0x70   : > { %s242_s8 = scalar_lea.sflag (!%p1224_p6), [#allocation4], %s1119_s7  ;;  %s245_s12 = scalar_lea.vmem (!%p1224_p6), [#allocation3], %s584_s6 }
  0x76   : > { %861 = dma.done.wait (%p1225_p10), %s242_s8, 256  }
  0x77   : > { %863 = vsyncadd (%p1225_p10), %s242_s8, 4294967040  ;;  %s250_s0 = sand.u32 1, %s970_s21   ;;  %s585_s25 = sshll.u32 %s1119_s7, 1 }
  0x78   : > { %s251_s29 = scalar_lea.sflag [#allocation7], %s250_s0  ;;  %s254_s14 = scalar_lea.vmem [#allocation6], %s585_s25 }
  0x79   : > { %865 = dma.done.wait (%p1225_p10), %s251_s29, 32  }
  0x7a   : > { %867 = vsyncadd (%p1225_p10), %s251_s29, 4294967264  ;;  %p1226_p13 = scmp.eq.s32.totalorder %s970_s21, 0 }
  0x7c   : > { %869 = dma.done.wait (%p1226_p13), [#allocation7], 768   ;;  %p1227_p3 = pmov %p1226_p13 }
  0x7d   : > { %v907_v0 = vmov 0.0   ;;  %vm908_vm0 = vmmov 0   ;;  %vm294_vm1 = vcmask 254976   ;;  %vm298_vm2 = vcmask 259072   ;;  %v293_v1 = vld [vmem:[%s254_s14] sm:$0x3] }
  0x7e   : > { %871 = vsyncadd (%p1227_p3), [#allocation7], 4294966528  ;;  %610 = vmatprep.subr.bf16.mxu0 %v907_v0  ;;  %622 = vmatprep.mubr.msk.bf16.mxu0 %vm908_vm0, %v907_v0  ;;  %vm296_vm3 = vcmask 261120   ;;  %v292_v2 = vld [vmem:[%s245_s12 + $0x8] sm:$0xff]  ;;  %v291_v3 = vld [vmem:[%s245_s12] sm:$0xff]  ;;  %s909_s9 = smov 32  }
  0x7f   : > { %301 = vrot.lane.b32.xlu0 %v293_v1, %s909_s9  ;;  %295 = vst.msk [vmem:[#allocation2] sm:$0x3] %vm294_vm1, %v293_v1  ;;  %310 = vrot.lane.b32.xlu1 %v292_v2, %s909_s9  ;;  %v714_v4 = vld [vmem:[#allocation8] sm:$0xff]   ;;  %v715_v5 = vld [vmem:[#allocation8 + $0x8] sm:$0xff]   ;;  %s910_s21 = smov 64   ;;  %v716_v6 = vld [vmem:[#allocation8 + $0x10] sm:$0xff]  }
  0x80   : > { %299 = vst.msk [vmem:[#allocation2 + $0xa] sm:$0x3f] %vm298_vm2, %v292_v2  ;;  %611 = vmatpush3.bf16.msra.mxu0 %v714_v4  ;;  %v717_v7 = vld [vmem:[#allocation8 + $0x18] sm:$0xff]   ;;  %v718_v8 = vld [vmem:[#allocation8 + $0x20] sm:$0xff]   ;;  %v719_v9 = vld [vmem:[#allocation8 + $0x28] sm:$0xff]   ;;  %vm304_vm4 = vcmask 517377  }
  0x81   : > { %297 = vst.msk [vmem:[#allocation2 + $0x2] sm:$0xff] %vm296_vm3, %v291_v3  ;;  %612 = vmatprep.subr.bf16.mxu0 %v907_v0  ;;  %vm316_vm5 = vcmask 522496   ;;  %vm314_vm6 = vcmask 523520   ;;  %vm324_vm7 = vcmask 785920   ;;  %vm385_vm8 = vcmask 785408   ;;  %s602_s11 = sshll.u32 %s890_s18, 8 }
  0x82   : > { %v588_v18 = vld [vmem:[%s1202_s3] ss:$0 sm:$0xff]  ;;  %s287_s13 = scalar_lea.vmem [#allocation9], %s584_s6  ;;  %vm434_vm9 = vcmask 523264   ;;  %s1148_s22 = scalar_lea.hbm %s1203_s4, %s602_s11 }
  0x83   : > { %308 = vrot.lane.b32.xlu0 %v291_v3, %s909_s9  ;;  %318 = vrot.lane.b32.xlu1 %v291_v3, %s910_s21  ;;  %s453_s26 = sshll.u32 %s287_s13, 4  ;;  %s438_s18 = scalar_lea.sflag [#allocation5], %s1119_s7  ;;  %s1150_s26 = int_to_ptr.vmem [resolvable:$true] %s453_s26 }
  0x84   : > { %613 = vmatpush3.bf16.msra.mxu0 %v715_v5  ;;  %s808_s30 = scalar_lea.vmem %s1150_s26, 256  ;;  %p1228_p0 = scmp.ne.s32.totalorder %s1219_s28, 0 }
  0x85   : > { %614 = vmatprep.subr.bf16.mxu0 %v907_v0  ;;  %p809_p12 = scmp.ne.s32.totalorder %s1150_s26, %s808_s30  ;;  %s911_s10 = smov [#allocation9]  }
  0x86   : > { %s812_s6 = sshll.u32 %s911_s10, 4  ;;  %s813_s6 = int_to_ptr.vmem [resolvable:$false] %s812_s6 }
  0x87   : > { %320 = vrot.lane.b32.xlu0 %v292_v2, %s910_s21  ;;  %p810_p5 = pnand %p809_p12, %p1228_p0  ;;  %s814_s8 = scalar_lea.vmem %s813_s6, 512 }
  0x88   : > { %615 = vmatpush3.bf16.msra.mxu0 %v716_v6  ;;  %p815_p1 = scmp.lt.s32.totalorder %s1150_s26, %s813_s6  ;;  %p816_p2 = scmp.lt.s32.totalorder %s814_s8, %s808_s30 }
  0x89   : > { %616 = vmatprep.subr.bf16.mxu0 %v907_v0  ;;  %p811_p9 = pneg %p810_p5 }
  0x8a   : > { %p817_p7 = por %p816_p2, %p815_p1 }
  0x8c   : > { %617 = vmatpush3.bf16.msra.mxu0 %v717_v7  ;;  %p818_p4 = pnand %p817_p7, %p811_p9 }
  0x8d   : > { %618 = vmatprep.subr.bf16.mxu0 %v907_v0 }
  0x90   : > { %619 = vmatpush3.bf16.msra.mxu0 %v718_v8 }
  0x91   : > { %620 = vmatprep.subr.bf16.mxu0 %v907_v0 }
  0x94   : > { %621 = vmatpush3.bf16.msra.mxu0 %v719_v9 }
  0xf1   : > { %v302_v10 = vpop.permute.xlu0 %301  ;;  %v311_v11 = vpop.permute.xlu1 %310 }
  0xf2   : > { %305 = vst.msk [vmem:[#allocation2 - $0x1] sm:$0x2] %vm304_vm4, %v302_v10 }
  0xf3   : > { %317 = vst.msk [vmem:[#allocation2 + $0x9] sm:$0x7f] %vm316_vm5, %v311_v11 }
  0xf5   : > { %v309_v12 = vpop.permute.xlu0 %308  ;;  %v319_v13 = vpop.permute.xlu1 %318 }
  0xf6   : > { %315 = vst.msk [vmem:[#allocation2 + $0x1] sm:$0xff] %vm314_vm6, %v309_v12 }
  0xf7   : > { %325 = vst.msk [vmem:[#allocation2] sm:$0xff] %vm324_vm7, %v319_v13 }
  0xf9   : > { %v321_v14 = vpop.permute.xlu0 %320 }
  0xfa   : > { %326 = vst.msk [vmem:[#allocation2 + $0x8] sm:$0xff] %vm324_vm7, %v321_v14 }
  0xfe   : > { %v327_v15 = vld [vmem:[#allocation2] sm:$0xff] }
 0x101   : > { %v328_v16 = vld [vmem:[#allocation2 + $0x8] sm:$0xff] }
 0x102   : > { %v329_v17 = vpack.c.bf16 %v328_v16, %v327_v15 }
 0x104   : > { %623 = vmatmul.mubr.msk.bf16.vlgmr.msra.gmra.mrb[0].mxu0 %vm385_vm8, %v329_v17 }
 0x1d7   : > { %v423_v19 = vpop.f32.mrb[0].mxu0 }
 0x1d8   : > { %v424_v20 = vadd.f32 %v588_v18, %v423_v19  ;;  %v624_v21 = vpop.f32.mrb[1].mxu0 }
 0x1d9   : > { %v426_v22 = vpop.f32.mrb[2].mxu0 }
 0x1da   : > { %v430_v23 = vmul.f32 0.01, %v424_v20  ;;  %v427_v24 = vadd.f32 %v588_v18, %v426_v22  ;;  %v625_v25 = vpop.f32.mrb[3].mxu0 }
 0x1dc   : > { %v432_v26 = vmax.f32 %v424_v20, %v430_v23  ;;  %v431_v27 = vmul.f32 0.01, %v427_v24 }
 0x1de   : > { %435 = vst.msk [vmem:[%s287_s13] sm:$0xff] %vm434_vm9, %v432_v26  ;;  %v433_v28 = vmax.f32 %v427_v24, %v431_v27 }
 0x1e0   : > { %436 = vst.msk [vmem:[%s287_s13 + $0x8] sm:$0xff] %vm434_vm9, %v433_v28 }
 0x1e1   : > { %821 = shalt.err (!%p818_p4)
}
 0x1e2   : > { %s822_s12 = scalar_lea.hbm %s1148_s22, 256  ;;  %s826_s29 = scalar_lea.hbm %s1203_s4, 512 }
 0x1e3   : > { %p823_p8 = scmp.ne.s32.totalorder %s1148_s22, %s822_s12  ;;  %p827_p10 = scmp.lt.u32.totalorder %s1148_s22, %s1203_s4 }
 0x1e4   : > { %p828_p13 = scmp.lt.u32.totalorder %s826_s29, %s822_s12  ;;  %p830_p12 = scmp.lt.u32.totalorder %s822_s12, %s1148_s22 }
 0x1e5   : > { %p824_p11 = pnand %p823_p8, %p1228_p0 }
 0x1e6   : > { %p829_p3 = por %p828_p13, %p827_p10 }
 0x1e7   : > { %p825_p6 = pneg %p824_p11 }
 0x1e8   : > { %p831_p5 = por %p830_p12, %p829_p3 }
 0x1ea   : > { %p832_p9 = pnand %p831_p5, %p825_p6 }
 0x1ec   : > { %835 = shalt.err (!%p832_p9)
}
 0x1ed   : > { %s912_s21 = smov 128   ;;  %s913_s23 = smov 8  }
 0x1ee   : > { %634 = dma.vmem_to_hbm [thread:$0]  (%p1228_p0), %s1150_s26, 256, %s1148_s22, %s438_s18, %s912_s21, %s912_s21, %s913_s23  }
 0x1ef PF: > { %s468_s27 = sand.u32 1, %s878_s15   ;;  %p1229_p1 = scmp.ne.s32.totalorder %s1212_s24, 0 }
 0x1f0   : > { %p1230_p2 = scmp.ge.s32.totalorder %s898_s20, 2  ;;  %s469_s11 = scalar_lea.sflag [#allocation5], %s468_s27 }
 0x1f2   : > { %p648_p7 = pnand %p1230_p2, %p1229_p1 }
 0x1f4   : > { %873 = dma.done.wait (!%p648_p7), %s469_s11, 256  }
 0x1f5   : > { %875 = vsyncadd (!%p648_p7), %s469_s11, 4294967040  ;;  %s23_s20 = sadd.s32 1, %s898_s20   ;;  %s1231_s13 = sld [smem:[#allocation15_spill]] }
 0x1f6   : > { %p20_p4 = scmp.ge.s32.totalorder %s23_s20, 4   ;;  %s1232_s28 = sld [smem:[#allocation14_spill]] }
 0x1f7   : > { %s1233_s15 = smov %s882_s16  ;;  %s1234_s16 = smov %s886_s17 }
 0x1f8   : > { %s1236_s18 = smov %s894_s19  ;;  %22 = sbr.rel (!%p20_p4) target bundleno = 11 (0xb), region = 98 }
 0x1fb   : > { %s1235_s17 = smov %s1231_s13 }
 0x1fc   : > { %s1237_s19 = smov %s1232_s28 }
 0x1ff   :  { %474 = vsyncpa [#allocation4], 1 }
 0x200   :  { %476 = vsyncpa [#allocation4 + $0x1], 1 }
 0x201   :  { %477 = vsyncpa [#allocation7], 1 }
 0x202   :  { %479 = vsyncpa [#allocation7 + $0x1], 1 }
 0x203   :  { %480 = vsyncpa [#allocation5], 1 }
 0x204   :  { %482 = vsyncpa [#allocation5 + $0x1], 1 }

</bundles_post_ra>
